<compile_context>
chip_gen: v7x
topology: tpu7x:2x2x1
jax: 0.10.0
libtpu: 0.0.40
codegen_flags: <defaults>
</compile_context>

<pallas_src>
import jax
import jax.numpy as jnp
from jax.experimental import pallas as pl
from jax.experimental.pallas import tpu as pltpu


LANE = 128  # TPU lane width; pad the class (output) dim to a multiple of this.


def _round_up(x, m):
    return ((x + m - 1) // m) * m


# ----------------------------------------------------------------------------
# Fused Pallas kernel (one batch tile per grid step)
# ----------------------------------------------------------------------------
def _classifier_fused_kernel(h_ref, mask_ref, pw_ref, pb_ref, fw_ref, fb_ref,
                             o_ref):
    # h_ref:    [TB, S, H]  embedded tokens for this batch tile
    # mask_ref: [TB, S, 1]  attention mask (0/1) as f32
    # pw_ref:   [H, H]      pooler weight      pb_ref: [1, H]  pooler bias
    # fw_ref:   [H, CP]     fc weight (classes zero-padded to CP = k*128)
    # fb_ref:   [1, CP]     fc bias   (zero-padded)
    # o_ref:    [TB, CP]    lane-dense logits
    h = h_ref[...]
    m = mask_ref[...]                                      # [TB, S, 1]

    # Masked mean pooling over the sequence axis (the "bert" pooled output).
    summed = jnp.sum(h * m, axis=1)                        # [TB, H]
    denom = jnp.maximum(jnp.sum(m, axis=1), 1.0)           # [TB, 1]
    mean = summed / denom                                  # [TB, H]

    # Pooler: H x H GEMM on the MXU, tanh on the EUP.
    pooled = jnp.tanh(
        jnp.dot(mean, pw_ref[...], preferred_element_type=jnp.float32)
        + pb_ref[...])                                     # [TB, H]

    # Classifier head: ReLU -> dropout (identity, eval mode) -> Linear.
    x = jnp.maximum(pooled, 0.0)
    logits = (jnp.dot(x, fw_ref[...], preferred_element_type=jnp.float32)
              + fb_ref[...])                               # [TB, CP]
    o_ref[...] = logits.astype(o_ref.dtype)


def classifier_fused(h, mask, pooler_w, pooler_b, fc_w, fc_b, *, tile_b=8):
    """h: [B, S, H] f32; mask: [B, S] f32 -> logits [B, num_classes] f32."""
    B, S, H = h.shape
    C = fc_w.shape[1]
    CP = _round_up(C, LANE)

    # Lane-dense output: zero-pad the class dim to a multiple of 128.
    fc_w_p = jnp.zeros((H, CP), fc_w.dtype).at[:, :C].set(fc_w)
    fc_b_p = jnp.zeros((1, CP), fc_b.dtype).at[0, :C].set(fc_b)
    pooler_b2 = pooler_b.reshape(1, H)
    mask3 = mask[:, :, None].astype(h.dtype)               # [B, S, 1]

    tb = min(tile_b, B)
    assert B % tb == 0, "batch must be a multiple of the batch tile"
    grid = (B // tb,)

    out = pl.pallas_call(
        _classifier_fused_kernel,
        out_shape=jax.ShapeDtypeStruct((B, CP), jnp.float32),
        grid=grid,
        in_specs=[
            pl.BlockSpec((tb, S, H), lambda i: (i, 0, 0)),   # activations
            pl.BlockSpec((tb, S, 1), lambda i: (i, 0, 0)),   # mask
            pl.BlockSpec((H, H), lambda i: (0, 0)),          # pooler_w
            pl.BlockSpec((1, H), lambda i: (0, 0)),          # pooler_b
            pl.BlockSpec((H, CP), lambda i: (0, 0)),         # fc_w (padded)
            pl.BlockSpec((1, CP), lambda i: (0, 0)),         # fc_b (padded)
        ],
        out_specs=pl.BlockSpec((tb, CP), lambda i: (i, 0)),
        compiler_params=pltpu.CompilerParams(
            dimension_semantics=("parallel",),
            vmem_limit_bytes=64 * 1024 * 1024,
        ),
    )(h, mask3, pooler_w, pooler_b2, fc_w_p, fc_b_p)
    return out[:, :C]


# ----------------------------------------------------------------------------
# Full Classifier forward (embedding gather in XLA, rest fused in Pallas)
# ----------------------------------------------------------------------------
def classifier_forward(params, input_ids, mask):
    h = params["emb_table"][input_ids]                     # [B, S, H]
    return classifier_fused(
        h, mask,
        params["pooler_w"], params["pooler_b"],
        params["fc_w"], params["fc_b"])


# Plain-JAX reference (same math) for the correctness check.
def classifier_reference(params, input_ids, mask):
    h = params["emb_table"][input_ids]
    m = mask[..., None]
    summed = jnp.sum(h * m, axis=1)
    denom = jnp.maximum(jnp.sum(m, axis=1), 1.0)
    mean = summed / denom
    pooled = jnp.tanh(mean @ params["pooler_w"] + params["pooler_b"])
    x = jnp.maximum(pooled, 0.0)
    return x @ params["fc_w"] + params["fc_b"]


if __name__ == "__main__":
    # Small, kernel-friendly shapes.
    batch = 8
    seq = 16
    hidden = 128
    num_classes = 8
    vocab = 64

    key = jax.random.PRNGKey(0)
    k_ids, k_emb, k_pw, k_pb, k_fw, k_fb = jax.random.split(key, 6)

    input_ids = jax.random.randint(k_ids, (batch, seq), 0, vocab, dtype=jnp.int32)
    mask = jnp.ones((batch, seq), dtype=jnp.float32)
    # Pad out the last few tokens of half the batch for a non-trivial mask.
    mask = mask.at[: batch // 2, seq - 4:].set(0.0)

    params = {
        "emb_table": jax.random.normal(k_emb, (vocab, hidden), jnp.float32) * 0.02,
        "pooler_w": jax.random.normal(k_pw, (hidden, hidden), jnp.float32) * 0.02,
        "pooler_b": jax.random.normal(k_pb, (hidden,), jnp.float32) * 0.02,
        "fc_w": jax.random.normal(k_fw, (hidden, num_classes), jnp.float32) * 0.02,
        "fc_b": jax.random.normal(k_fb, (num_classes,), jnp.float32) * 0.02,
    }

    logits = classifier_forward(params, input_ids, mask)
    logits = jax.block_until_ready(logits)

    logits_ref = classifier_reference(params, input_ids, mask)
    assert logits.shape == (batch, num_classes)
    assert jnp.allclose(logits, logits_ref, atol=2e-5, rtol=2e-5)

    print("KERNEL_OK")
</pallas_src>

<mosaic_0001>
module attributes {stable_mosaic.version = 11 : i64} {
  func.func @_classifier_fused_kernel(%arg0: i32, %arg1: memref<8x16x128xf32, #tpu.memory_space<vmem>>, %arg2: memref<8x16x1xf32, #tpu.memory_space<vmem>>, %arg3: memref<128x128xf32, #tpu.memory_space<vmem>>, %arg4: memref<1x128xf32, #tpu.memory_space<vmem>>, %arg5: memref<128x128xf32, #tpu.memory_space<vmem>>, %arg6: memref<1x128xf32, #tpu.memory_space<vmem>>, %arg7: memref<8x128xf32, #tpu.memory_space<vmem>>) attributes {dimension_semantics = [#tpu.dimension_semantics<parallel>], iteration_bounds = array<i64: 1>, scalar_prefetch = 0 : i64, scratch_operands = 0 : i64, tpu.core_type = #tpu.core_type<tc>, window_params = [{transform_indices = @transform_0, window_bounds = array<i64: 8, 16, 128>}, {transform_indices = @transform_1, window_bounds = array<i64: 8, 16, 1>}, {pipeline_mode = #tpu.pipeline_mode<synchronous>, transform_indices = @transform_2, window_bounds = array<i64: 128, 128>}, {pipeline_mode = #tpu.pipeline_mode<synchronous>, transform_indices = @transform_3, window_bounds = array<i64: 1, 128>}, {pipeline_mode = #tpu.pipeline_mode<synchronous>, transform_indices = @transform_4, window_bounds = array<i64: 128, 128>}, {pipeline_mode = #tpu.pipeline_mode<synchronous>, transform_indices = @transform_5, window_bounds = array<i64: 1, 128>}, {transform_indices = @transform_6, window_bounds = array<i64: 8, 128>}]} {
    %c0 = arith.constant 0 : index
    %c0_0 = arith.constant 0 : index
    %c0_1 = arith.constant 0 : index
    %0 = vector.load %arg1[%c0, %c0_0, %c0_1] : memref<8x16x128xf32, #tpu.memory_space<vmem>>, vector<8x16x128xf32>
    %c0_2 = arith.constant 0 : index
    %c0_3 = arith.constant 0 : index
    %c0_4 = arith.constant 0 : index
    %1 = vector.load %arg2[%c0_2, %c0_3, %c0_4] : memref<8x16x1xf32, #tpu.memory_space<vmem>>, vector<8x16x1xf32>
    %2 = vector.broadcast %1 : vector<8x16x1xf32> to vector<8x16x128xf32>
    %3 = arith.mulf %0, %2 : vector<8x16x128xf32>
    %cst = arith.constant dense<0.000000e+00> : vector<8x128xf32>
    %4 = vector.multi_reduction <add>, %3, %cst [1] : vector<8x16x128xf32> to vector<8x128xf32>
    %cst_5 = arith.constant dense<0.000000e+00> : vector<8x1xf32>
    %5 = vector.multi_reduction <add>, %1, %cst_5 [1] : vector<8x16x1xf32> to vector<8x1xf32>
    %cst_6 = arith.constant 1.000000e+00 : f32
    %6 = vector.broadcast %cst_6 : f32 to vector<8x1xf32>
    %7 = arith.maximumf %5, %6 : vector<8x1xf32>
    %8 = vector.broadcast %7 : vector<8x1xf32> to vector<8x128xf32>
    %9 = arith.divf %4, %8 : vector<8x128xf32>
    %c0_7 = arith.constant 0 : index
    %c0_8 = arith.constant 0 : index
    %10 = vector.load %arg3[%c0_7, %c0_8] : memref<128x128xf32, #tpu.memory_space<vmem>>, vector<128x128xf32>
    %cst_9 = arith.constant dense<0.000000e+00> : vector<8x128xf32>
    %11 = tpu.matmul %9, %10, %cst_9 {dimension_numbers = #tpu.dot_dimension_numbers<[1], [0], [0], [1], [0, 0, 1, 1], [], []>} : vector<8x128xf32>, vector<128x128xf32>, vector<8x128xf32> -> vector<8x128xf32>
    %c0_10 = arith.constant 0 : index
    %c0_11 = arith.constant 0 : index
    %12 = vector.load %arg4[%c0_10, %c0_11] : memref<1x128xf32, #tpu.memory_space<vmem>>, vector<1x128xf32>
    %13 = vector.broadcast %12 : vector<1x128xf32> to vector<8x128xf32>
    %14 = arith.addf %11, %13 : vector<8x128xf32>
    %15 = math.tanh %14 : vector<8x128xf32>
    %cst_12 = arith.constant 0.000000e+00 : f32
    %16 = vector.broadcast %cst_12 : f32 to vector<8x128xf32>
    %17 = arith.maximumf %15, %16 : vector<8x128xf32>
    %c0_13 = arith.constant 0 : index
    %c0_14 = arith.constant 0 : index
    %18 = vector.load %arg5[%c0_13, %c0_14] : memref<128x128xf32, #tpu.memory_space<vmem>>, vector<128x128xf32>
    %cst_15 = arith.constant dense<0.000000e+00> : vector<8x128xf32>
    %19 = tpu.matmul %17, %18, %cst_15 {dimension_numbers = #tpu.dot_dimension_numbers<[1], [0], [0], [1], [0, 0, 1, 1], [], []>} : vector<8x128xf32>, vector<128x128xf32>, vector<8x128xf32> -> vector<8x128xf32>
    %c0_16 = arith.constant 0 : index
    %c0_17 = arith.constant 0 : index
    %20 = vector.load %arg6[%c0_16, %c0_17] : memref<1x128xf32, #tpu.memory_space<vmem>>, vector<1x128xf32>
    %21 = vector.broadcast %20 : vector<1x128xf32> to vector<8x128xf32>
    %22 = arith.addf %19, %21 : vector<8x128xf32>
    %c0_18 = arith.constant 0 : index
    %c0_19 = arith.constant 0 : index
    %23 = vector.load %arg7[%c0_18, %c0_19] : memref<8x128xf32, #tpu.memory_space<vmem>>, vector<8x128xf32>
    tpu.vector_store %arg7[%c0_18, %c0_19], %22 {strides = array<i32>} : memref<8x128xf32, #tpu.memory_space<vmem>>, vector<8x128xf32>,
    return
  }
  func.func @transform_0(%arg0: i32) -> (i32, i32, i32) {
    %c0_i32 = arith.constant 0 : i32
    %c0_i32_0 = arith.constant 0 : i32
    %c0_i32_1 = arith.constant 0 : i32
    return %arg0, %c0_i32, %c0_i32_0 : i32, i32, i32
  }
  func.func @transform_1(%arg0: i32) -> (i32, i32, i32) {
    %c0_i32 = arith.constant 0 : i32
    %c0_i32_0 = arith.constant 0 : i32
    %c0_i32_1 = arith.constant 0 : i32
    return %arg0, %c0_i32, %c0_i32_0 : i32, i32, i32
  }
  func.func @transform_2(%arg0: i32) -> (i32, i32) {
    %c0_i32 = arith.constant 0 : i32
    %c0_i32_0 = arith.constant 0 : i32
    %c0_i32_1 = arith.constant 0 : i32
    return %c0_i32, %c0_i32_0 : i32, i32
  }
  func.func @transform_3(%arg0: i32) -> (i32, i32) {
    %c0_i32 = arith.constant 0 : i32
    %c0_i32_0 = arith.constant 0 : i32
    %c0_i32_1 = arith.constant 0 : i32
    return %c0_i32, %c0_i32_0 : i32, i32
  }
  func.func @transform_4(%arg0: i32) -> (i32, i32) {
    %c0_i32 = arith.constant 0 : i32
    %c0_i32_0 = arith.constant 0 : i32
    %c0_i32_1 = arith.constant 0 : i32
    return %c0_i32, %c0_i32_0 : i32, i32
  }
  func.func @transform_5(%arg0: i32) -> (i32, i32) {
    %c0_i32 = arith.constant 0 : i32
    %c0_i32_0 = arith.constant 0 : i32
    %c0_i32_1 = arith.constant 0 : i32
    return %c0_i32, %c0_i32_0 : i32, i32
  }
  func.func @transform_6(%arg0: i32) -> (i32, i32) {
    %c0_i32 = arith.constant 0 : i32
    %c0_i32_0 = arith.constant 0 : i32
    return %arg0, %c0_i32 : i32, i32
  }
}

</mosaic_0001>

<bundles_post_ra>
// kernel: tpu_custom_call.1
= control target key start
LH: loop header
LB: loop body
LE: loop exit
PB: predicated region body
PF: predicated region fallthrough
CT: control target
= control target key end

     0   :  { %11 = vsyncpa [#allocation3], 0  ;;  %s1203_s0 = inlined_call_operand.hbm [shape: f32[8,16,128], index: 0, kind: input, shape index: {}]   ;;  %s1204_s1 = inlined_call_operand.hbm [shape: f32[8,16,1], index: 1, kind: input, shape index: {}]   ;;  %s1205_s2 = inlined_call_operand.hbm [shape: f32[128,128], index: 2, kind: input, shape index: {}]   ;;  %s1206_s3 = inlined_call_operand.hbm [shape: f32[1,128], index: 3, kind: input, shape index: {}]   ;;  %s1207_s4 = inlined_call_operand.hbm [shape: f32[128,128], index: 4, kind: input, shape index: {}]   ;;  %s1208_s5 = inlined_call_operand.hbm [shape: f32[1,128], index: 5, kind: input, shape index: {}]   ;;  %s1209_s6 = inlined_call_operand.hbm [shape: f32[8,128], index: 6, kind: output, shape index: {}]  }
   0x1   :  { %12 = vsyncpa [#allocation6], 0 }
   0x2   :  { %13 = vsyncpa [#allocation9], 0 }
   0x3   :  { %14 = vsyncpa [#allocation12], 0 }
   0x4   :  { %15 = vsyncpa [#allocation4], 0  ;;  %s1004_s21 = smov [#allocation5]   ;;  %s1005_s23 = smov [#allocation8]  }
   0x5   :  { %s33_s22 = sshll.u32 %s1004_s21, 4  ;;  %s58_s24 = sshll.u32 %s1005_s23, 4  ;;  %s34_s22 = int_to_ptr.vmem [resolvable:$true] %s33_s22  ;;  %s1052_s24 = int_to_ptr.vmem [resolvable:$true] %s58_s24 }
   0x6   :  { %s840_s27 = scalar_lea.hbm %s1204_s1, 2048 }
   0x7   :  { %p841_p0 = scmp.ne.s32.totalorder %s1204_s1, %s840_s27  ;;  %p844_p1 = scmp.lt.u32.totalorder %s840_s27, %s1204_s1 }
   0x9   :  { %p846_p2 = pnand %p844_p1, %p841_p0 }
   0xb   :  { %849 = shalt.err (!%p846_p2)
}
   0xc   :  { %s850_s8 = scalar_lea.vmem %s34_s22, 2048  ;;  %p855_p4 = scmp.lt.s32.totalorder %s34_s22, %s34_s22 }
   0xd   :  { %p851_p3 = scmp.ne.s32.totalorder %s34_s22, %s850_s8  ;;  %p856_p5 = scmp.lt.s32.totalorder %s850_s8, %s850_s8 }
   0xf   :  { %p857_p6 = por %p856_p5, %p855_p4 }
  0x11   :  { %p858_p7 = pnand %p857_p6, %p851_p3 }
  0x13   :  { %861 = shalt.err (!%p858_p7)
}
  0x14   :  { %s1006_s9 = smov 128   ;;  %s1007_s10 = smov 8  }
  0x15   :  { %39 = dma.hbm_to_vmem [thread:$0]  %s1204_s1, 2048, %s34_s22, [#allocation6], %s1006_s9, %s1006_s9, %s1007_s10  }
  0x16   :  { %s862_s15 = scalar_lea.hbm %s1206_s3, 16 }
  0x17   :  { %p863_p8 = scmp.ne.s32.totalorder %s1206_s3, %s862_s15  ;;  %p866_p9 = scmp.lt.u32.totalorder %s862_s15, %s1206_s3 }
  0x19   :  { %p868_p10 = pnand %p866_p9, %p863_p8 }
  0x1b   :  { %871 = shalt.err (!%p868_p10)
}
  0x1c   :  { %s872_s20 = scalar_lea.vmem %s1052_s24, 16  ;;  %s876_s1 = scalar_lea.vmem %s1052_s24, 32 }
  0x1d   :  { %p873_p11 = scmp.ne.s32.totalorder %s1052_s24, %s872_s20  ;;  %p877_p12 = scmp.lt.s32.totalorder %s1052_s24, %s1052_s24 }
  0x1e   :  { %p878_p13 = scmp.lt.s32.totalorder %s876_s1, %s872_s20 }
  0x20   :  { %p879_p0 = por %p878_p13, %p877_p12 }
  0x22   :  { %p880_p1 = pnand %p879_p0, %p873_p11 }
  0x24   :  { %883 = shalt.err (!%p880_p1)
}
  0x25   :  { %61 = dma.hbm_to_vmem [thread:$0]  %s1206_s3, 16, %s1052_s24, [#allocation9]  }
  0x26   :  { %s1008_s23 = smov [#allocation2]   ;;  %s1009_s26 = smov [#allocation7]  }
  0x27   :  { %s21_s25 = sshll.u32 %s1008_s23, 4  ;;  %s45_s27 = sshll.u32 %s1009_s26, 4  ;;  %s22_s25 = int_to_ptr.vmem [resolvable:$true] %s21_s25  ;;  %s1087_s27 = int_to_ptr.vmem [resolvable:$true] %s45_s27 }
  0x28   :  { %s884_s30 = scalar_lea.hbm %s1203_s0, 2048 }
  0x29   :  { %p885_p2 = scmp.ne.s32.totalorder %s1203_s0, %s884_s30  ;;  %p888_p3 = scmp.lt.u32.totalorder %s884_s30, %s1203_s0 }
  0x2b   :  { %p890_p4 = pnand %p888_p3, %p885_p2 }
  0x2d   :  { %893 = shalt.err (!%p890_p4)
}
  0x2e   :  { %s894_s3 = scalar_lea.vmem %s22_s25, 2048  ;;  %p899_p6 = scmp.lt.s32.totalorder %s22_s25, %s22_s25 }
  0x2f   :  { %p895_p5 = scmp.ne.s32.totalorder %s22_s25, %s894_s3  ;;  %p900_p7 = scmp.lt.s32.totalorder %s894_s3, %s894_s3 }
  0x31   :  { %p901_p8 = por %p900_p7, %p899_p6 }
  0x33   :  { %p902_p9 = pnand %p901_p8, %p895_p5 }
  0x35   :  { %905 = shalt.err (!%p902_p9)
}
  0x36   :  { %27 = dma.hbm_to_vmem [thread:$0]  %s1203_s0, 2048, %s22_s25, [#allocation3], %s1006_s9, %s1006_s9, %s1007_s10  }
  0x37   :  { %s906_s16 = scalar_lea.hbm %s1205_s2, 2048 }
  0x38   :  { %p907_p10 = scmp.ne.s32.totalorder %s1205_s2, %s906_s16  ;;  %p910_p11 = scmp.lt.u32.totalorder %s906_s16, %s1205_s2 }
  0x3a   :  { %p912_p12 = pnand %p910_p11, %p907_p10 }
  0x3c   :  { %915 = shalt.err (!%p912_p12)
}
  0x3d   :  { %s916_s1 = scalar_lea.vmem %s1087_s27, 2048  ;;  %p921_p0 = scmp.lt.s32.totalorder %s1087_s27, %s1087_s27 }
  0x3e   :  { %p917_p13 = scmp.ne.s32.totalorder %s1087_s27, %s916_s1  ;;  %p922_p1 = scmp.lt.s32.totalorder %s916_s1, %s916_s1 }
  0x40   :  { %p923_p2 = por %p922_p1, %p921_p0 }
  0x42   :  { %p924_p3 = pnand %p923_p2, %p917_p13 }
  0x44   :  { %927 = shalt.err (!%p924_p3)
}
  0x45   :  { %51 = dma.hbm_to_vmem [thread:$0]  %s1205_s2, 2048, %s1087_s27, [#allocation6], %s1006_s9, %s1006_s9, %s1007_s10  }
  0x46   :  { %s1010_s22 = smov [#allocation10]   ;;  %s1011_s25 = smov [#allocation11]  }
  0x47   :  { %s67_s23 = sshll.u32 %s1010_s22, 4  ;;  %s80_s26 = sshll.u32 %s1011_s25, 4  ;;  %s68_s23 = int_to_ptr.vmem [resolvable:$true] %s67_s23  ;;  %s81_s26 = int_to_ptr.vmem [resolvable:$true] %s80_s26 }
  0x48   :  { %s928_s30 = scalar_lea.hbm %s1207_s4, 2048 }
  0x49   :  { %p929_p4 = scmp.ne.s32.totalorder %s1207_s4, %s928_s30  ;;  %p932_p5 = scmp.lt.u32.totalorder %s928_s30, %s1207_s4 }
  0x4b   :  { %p934_p6 = pnand %p932_p5, %p929_p4 }
  0x4d   :  { %937 = shalt.err (!%p934_p6)
}
  0x4e   :  { %s938_s2 = scalar_lea.vmem %s68_s23, 2048  ;;  %p943_p8 = scmp.lt.s32.totalorder %s68_s23, %s68_s23 }
  0x4f   :  { %p939_p7 = scmp.ne.s32.totalorder %s68_s23, %s938_s2  ;;  %p944_p9 = scmp.lt.s32.totalorder %s938_s2, %s938_s2 }
  0x51   :  { %p945_p10 = por %p944_p9, %p943_p8 }
  0x53   :  { %p946_p11 = pnand %p945_p10, %p939_p7 }
  0x55   :  { %949 = shalt.err (!%p946_p11)
}
  0x56   :  { %73 = dma.hbm_to_vmem [thread:$0]  %s1207_s4, 2048, %s68_s23, [#allocation9], %s1006_s9, %s1006_s9, %s1007_s10  }
  0x57   :  { %s950_s14 = scalar_lea.hbm %s1208_s5, 16 }
  0x58   :  { %p951_p12 = scmp.ne.s32.totalorder %s1208_s5, %s950_s14  ;;  %p954_p13 = scmp.lt.u32.totalorder %s950_s14, %s1208_s5 }
  0x5a   :  { %p956_p0 = pnand %p954_p13, %p951_p12 }
  0x5c   :  { %959 = shalt.err (!%p956_p0)
}
  0x5d   :  { %s960_s19 = scalar_lea.vmem %s81_s26, 16  ;;  %s964_s20 = scalar_lea.vmem %s81_s26, 32 }
  0x5e   :  { %p961_p1 = scmp.ne.s32.totalorder %s81_s26, %s960_s19  ;;  %p965_p2 = scmp.lt.s32.totalorder %s81_s26, %s81_s26 }
  0x5f   :  { %p966_p3 = scmp.lt.s32.totalorder %s964_s20, %s960_s19 }
  0x61   :  { %p967_p4 = por %p966_p3, %p965_p2 }
  0x63   :  { %p968_p5 = pnand %p967_p4, %p961_p1 }
  0x65   :  { %971 = shalt.err (!%p968_p5)
}
  0x66   :  { %83 = dma.hbm_to_vmem [thread:$0]  %s1208_s5, 16, %s81_s26, [#allocation12]  }
  0x67   :  { %994 = dma.done.wait [#allocation3], 2048  }
  0x68   :  { %995 = vsyncadd [#allocation3], 4294965248 }
  0x69   :  { %996 = dma.done.wait [#allocation6], 4096  }
  0x6a   :  { %997 = vsyncadd [#allocation6], 4294963200 }
  0x6b   :  { %998 = dma.done.wait [#allocation9], 2064  }
  0x6c   :  { %999 = vsyncadd [#allocation9], 4294965232 }
  0x6d   :  { %1000 = dma.done.wait [#allocation12], 16  }
  0x6e   :  { %1001 = vsyncadd [#allocation12], 4294967280  ;;  %v1012_v0 = vmov 0   ;;  %vm286_vm0 = vcmask 7168   ;;  %v120_v1 = vld [vmem:[#allocation5 + $0x10] sm:$0xff]  ;;  %v118_v2 = vld [vmem:[#allocation5] sm:$0xff] }
  0x6f   :  { %821 = vset.pattern.permute.xlu1 %v1012_v0  ;;  %820 = vset.pattern.permute.xlu0 %v1012_v0  ;;  %v121_v3 = vld [vmem:[#allocation5 + $0x18] sm:$0xff]  ;;  %v296_v4 = vsel %vm286_vm0, %v120_v1, 0.0  ;;  %v287_v5 = vsel %vm286_vm0, %v118_v2, 0.0  ;;  %v119_v7 = vld [vmem:[#allocation5 + $0x8] sm:$0xff]  ;;  %v122_v9 = vld [vmem:[#allocation5 + $0x20] sm:$0xff]  ;;  %vm1014_vm1 = vmmov 0  }
  0x70   :  { %146 = vperm.xlu1 %821, %v120_v1   ;;  %136 = vperm.xlu0 %820, %v118_v2   ;;  %v297_v6 = vsel %vm286_vm0, %v121_v3, 0.0  ;;  %v123_v8 = vld [vmem:[#allocation5 + $0x28] sm:$0xff]  ;;  %v288_v11 = vsel %vm286_vm0, %v119_v7, 0.0  ;;  %v305_v13 = vsel %vm286_vm0, %v122_v9, 0.0  ;;  %v125_v14 = vld [vmem:[#allocation5 + $0x38] sm:$0xff]  ;;  %v124_v15 = vld [vmem:[#allocation5 + $0x30] sm:$0xff] }
  0x71   :  { %v298_v10 = vadd.f32 %v297_v6, %v296_v4  ;;  %v306_v12 = vsel %vm286_vm0, %v123_v8, 0.0  ;;  %v289_v16 = vadd.f32 %v288_v11, %v287_v5  ;;  %v315_v18 = vsel %vm286_vm0, %v125_v14, 0.0  ;;  %v127_v20 = vld [vmem:[#allocation5 + $0x48] sm:$0xff]  ;;  %v126_v21 = vld [vmem:[#allocation5 + $0x40] sm:$0xff]  ;;  %v129_v26 = vld [vmem:[#allocation5 + $0x58] sm:$0xff]  ;;  %s1016_s5 = smov [#allocation13]  }
  0x72   :  { %v307_v17 = vadd.f32 %v306_v12, %v305_v13  ;;  %v314_v19 = vsel %vm286_vm0, %v124_v15, 0.0  ;;  %v324_v24 = vsel %vm286_vm0, %v127_v20, 0.0  ;;  %v323_v25 = vsel %vm286_vm0, %v126_v21, 0.0  ;;  %v128_v29 = vld [vmem:[#allocation5 + $0x50] sm:$0xff]  ;;  %v1163_v34 = vld [vmem:[#allocation5 + $0x78] sm:$0xff]  ;;  %v131_v39 = vld [vmem:[#allocation5 + $0x68] sm:$0xff] }
  0x73   :  { %v299_v22 = vrot.slane %v298_v10, 4  ;;  %v316_v23 = vadd.f32 %v315_v18, %v314_v19  ;;  %v290_v27 = vrot.slane %v289_v16, 4  ;;  %v333_v28 = vsel %vm286_vm0, %v129_v26, 0.0  ;;  %v1165_v35 = vld [vmem:[#allocation5 + $0x70] sm:$0xff]  ;;  %v130_v40 = vld [vmem:[#allocation5 + $0x60] sm:$0xff]  ;;  %s641_s10 = sshll.u32 %s1016_s5, 4  ;;  %s642_s10 = int_to_ptr.vmem [resolvable:$true] %s641_s10 }
  0x74   :  { %151 = vperm.xlu1 %821, %v121_v3   ;;  %141 = vperm.xlu0 %820, %v119_v7   ;;  %v332_v31 = vsel %vm286_vm0, %v128_v29, 0.0  ;;  %v325_v33 = vadd.f32 %v324_v24, %v323_v25  ;;  %v308_v36 = vrot.slane %v307_v17, 4  ;;  %v342_v43 = vsel %vm286_vm0, %v131_v39, 0.0  ;;  %v425_v25 = vld [vmem:[#allocation7 + $0x10] sm:$0xff]  ;;  %s972_s1 = scalar_lea.vmem %s642_s10, 128  ;;  %p977_p7 = scmp.lt.s32.totalorder %s642_s10, %s642_s10 }
  0x75   :  { %v300_v30 = vadd.f32 %v299_v22, %v298_v10  ;;  %v291_v32 = vadd.f32 %v290_v27, %v289_v16  ;;  %v317_v37 = vrot.slane %v316_v23, 4  ;;  %v334_v38 = vadd.f32 %v333_v28, %v332_v31  ;;  %v424_v16 = vld [vmem:[#allocation7 + $0x8] sm:$0xff]  ;;  %p973_p6 = scmp.ne.s32.totalorder %s642_s10, %s972_s1  ;;  %p978_p8 = scmp.lt.s32.totalorder %s972_s1, %s972_s1 }
  0x76   :  { %v341_v44 = vsel %vm286_vm0, %v130_v40, 0.0  ;;  %v351_v45 = vsel %vm286_vm0, %v1163_v34, 0.0  ;;  %v350_v46 = vsel %vm286_vm0, %v1165_v35, 0.0  ;;  %v326_v47 = vrot.slane %v325_v33, 4 }
  0x77   :  { %v301_v41 = vrot.slane %v300_v30, 2  ;;  %v292_v42 = vrot.slane %v291_v32, 2  ;;  %v309_v48 = vadd.f32 %v308_v36, %v307_v17  ;;  %v318_v49 = vadd.f32 %v317_v37, %v316_v23  ;;  %v427_v36 = vld [vmem:[#allocation7 + $0x20] sm:$0xff]  ;;  %v428_v37 = vld [vmem:[#allocation7 + $0x28] sm:$0xff]  ;;  %p979_p9 = por %p978_p8, %p977_p7 }
  0x78   :  { %161 = vperm.xlu1 %821, %v123_v8   ;;  %156 = vperm.xlu0 %820, %v122_v9   ;;  %v335_v50 = vrot.slane %v334_v38, 4  ;;  %v343_v51 = vadd.f32 %v342_v43, %v341_v44  ;;  %v352_v54 = vadd.f32 %v351_v45, %v350_v46  ;;  %v327_v55 = vadd.f32 %v326_v47, %v325_v33  ;;  %v430_v43 = vld [vmem:[#allocation7 + $0x38] sm:$0xff]  ;;  %v431_v46 = vld [vmem:[#allocation7 + $0x40] sm:$0xff]  ;;  %v432_v47 = vld [vmem:[#allocation7 + $0x48] sm:$0xff] }
  0x79   :  { %v302_v52 = vadd.f32 %v301_v41, %v300_v30  ;;  %v293_v53 = vadd.f32 %v292_v42, %v291_v32  ;;  %v310_v56 = vrot.slane %v309_v48, 2  ;;  %v319_v57 = vrot.slane %v318_v49, 2  ;;  %p980_p10 = pnand %p979_p9, %p973_p6 }
  0x7a   :  { %v336_v58 = vadd.f32 %v335_v50, %v334_v38  ;;  %v344_v59 = vrot.slane %v343_v51, 4  ;;  %v353_v62 = vrot.slane %v352_v54, 4  ;;  %v328_v63 = vrot.slane %v327_v55, 2  ;;  %v434_v50 = vld [vmem:[#allocation7 + $0x58] sm:$0xff] }
  0x7b   :  { %v303_v60 = vrot.slane %v302_v52, 1  ;;  %v294_v61 = vrot.slane %v293_v53, 1  ;;  %v320_v2 = vadd.f32 %v319_v57, %v318_v49  ;;  %v311_v3 = vadd.f32 %v310_v56, %v309_v48  ;;  %v433_v49 = vld [vmem:[#allocation7 + $0x50] sm:$0xff]  ;;  %v438_v56 = vld [vmem:[#allocation7 + $0x78] sm:$0xff] }
  0x7c   :  { %171 = vperm.xlu1 %821, %v125_v14   ;;  %166 = vperm.xlu0 %820, %v124_v15   ;;  %v337_v0 = vrot.slane %v336_v58, 2  ;;  %v345_v1 = vadd.f32 %v344_v59, %v343_v51  ;;  %v354_v6 = vadd.f32 %v353_v62, %v352_v54  ;;  %v329_v10 = vadd.f32 %v328_v63, %v327_v55  ;;  %v423_v15 = vld [vmem:[#allocation7] sm:$0xff]  ;;  %v437_v55 = vld [vmem:[#allocation7 + $0x70] sm:$0xff] }
  0x7d   :  { %v304_v4 = vadd.f32 %v303_v60, %v302_v52  ;;  %v295_v5 = vadd.f32 %v294_v61, %v293_v53  ;;  %v321_v7 = vrot.slane %v320_v2, 1  ;;  %v312_v8 = vrot.slane %v311_v3, 1  ;;  %v435_v52 = vld [vmem:[#allocation7 + $0x60] sm:$0xff]  ;;  %v436_v53 = vld [vmem:[#allocation7 + $0x68] sm:$0xff]  ;;  %v543_v61 = vld [vmem:[#allocation10 + $0x10] sm:$0xff] }
  0x7e   :  { %v338_v9 = vadd.f32 %v337_v0, %v336_v58  ;;  %v346_v11 = vrot.slane %v345_v1, 2  ;;  %v355_v14 = vrot.slane %v354_v6, 2  ;;  %v330_v18 = vrot.slane %v329_v10, 1  ;;  %v541_v59 = vld [vmem:[#allocation10] sm:$0xff]  ;;  %v542_v60 = vld [vmem:[#allocation10 + $0x8] sm:$0xff]  ;;  %v544_v63 = vld [vmem:[#allocation10 + $0x18] sm:$0xff] }
  0x7f   :  { %v360_v12 = vmax.f32 %v304_v4, 1.0  ;;  %v359_v13 = vmax.f32 %v295_v5, 1.0  ;;  %v322_v17 = vadd.f32 %v321_v7, %v320_v2  ;;  %v760_v19 = vpack.c.bf16 %v424_v16, %v423_v15  ;;  %v546_v2 = vld [vmem:[#allocation10 + $0x28] sm:$0xff]  ;;  %v547_v4 = vld [vmem:[#allocation10 + $0x30] sm:$0xff]  ;;  %v548_v5 = vld [vmem:[#allocation10 + $0x38] sm:$0xff] }
  0x80   :  { %181 = vperm.xlu1 %821, %v127_v20   ;;  %176 = vperm.xlu0 %820, %v126_v21   ;;  %v313_v20 = vadd.f32 %v312_v8, %v311_v3  ;;  %v339_v21 = vrot.slane %v338_v9, 1  ;;  %v356_v22 = vadd.f32 %v355_v14, %v354_v6  ;;  %v347_v23 = vadd.f32 %v346_v11, %v345_v1  ;;  %v545_v1 = vld [vmem:[#allocation10 + $0x20] sm:$0xff]  ;;  %v104_v16 = vld [vmem:[#allocation2 + $0x10] sm:$0xff] }
  0x81   :  { %v1013_v24 = vmov 0.0|0.0   ;;  %v362_v27 = vmax.f32 %v322_v17, 1.0  ;;  %v331_v28 = vadd.f32 %v330_v18, %v329_v10  ;;  %v766_v38 = vpack.c.bf16 %v428_v37, %v427_v36  ;;  %v103_v17 = vld [vmem:[#allocation2 + $0x8] sm:$0xff] }
  0x82   :  { %759 = vmatprep.subr.bf16.mxu0 %v1013_v24  ;;  %783 = vmatprep.subr.bf16.mxu1 %v1013_v24  ;;  %v361_v30 = vmax.f32 %v313_v20, 1.0  ;;  %v340_v31 = vadd.f32 %v339_v21, %v338_v9  ;;  %v357_v32 = vrot.slane %v356_v22, 1  ;;  %v348_v33 = vrot.slane %v347_v23, 1 }
  0x83   :  { %761 = vmatpush3.bf16.msra.mxu0 %v760_v19  ;;  %v772_v48 = vpack.c.bf16 %v432_v47, %v431_v46  ;;  %v775_v51 = vpack.c.bf16 %v434_v50, %v433_v49  ;;  %v778_v54 = vpack.c.bf16 %v436_v53, %v435_v52  ;;  %v1015_v57 = vmov 0.0   ;;  %v102_v19 = vld [vmem:[#allocation2] sm:$0xff] }
  0x84   :  { %191 = vperm.xlu1 %821, %v129_v26   ;;  %186 = vperm.xlu0 %820, %v128_v29   ;;  %v426_v26 = vld [vmem:[#allocation7 + $0x18] sm:$0xff]  ;;  %v358_v41 = vadd.f32 %v357_v32, %v356_v22  ;;  %v349_v42 = vadd.f32 %v348_v33, %v347_v23  ;;  %v781_v58 = vpack.c.bf16 %v438_v56, %v437_v55  ;;  %v107_v22 = vld [vmem:[#allocation2 + $0x28] sm:$0xff]  ;;  %v106_v23 = vld [vmem:[#allocation2 + $0x20] sm:$0xff]  ;;  %vm454_vm2 = vcmask 1041409  }
  0x85   :  { %762 = vmatprep.subr.bf16.mxu0 %v1013_v24  ;;  %v763_v29 = vpack.c.bf16 %v426_v26, %v425_v25  ;;  %721 = vmatprep.mubr.msk.f32.mxu0 %vm1014_vm1, %v1015_v57  ;;  %v784_v62 = vpack.c.bf16 %v542_v60, %v541_v59  ;;  %v787_v0 = vpack.c.bf16 %v544_v63, %v543_v61  ;;  %v114_v53 = vld [vmem:[#allocation2 + $0x60] sm:$0xff]  ;;  %vm456_vm3 = vcmask 1042434  }
  0x86   :  { %v366_v44 = vmax.f32 %v358_v41, 1.0  ;;  %v365_v45 = vmax.f32 %v349_v42, 1.0  ;;  %756 = vmatprep.mubr.msk.f32.mxu1 %vm1014_vm1, %v1015_v57  ;;  %v790_v3 = vpack.c.bf16 %v546_v2, %v545_v1  ;;  %v793_v6 = vpack.c.bf16 %v548_v5, %v547_v4  ;;  %v113_v42 = vld [vmem:[#allocation2 + $0x58] sm:$0xff]  ;;  %v116_v1 = vld [vmem:[#allocation2 + $0x70] sm:$0xff] }
  0x87   :  { %764 = vmatpush3.bf16.msra.mxu0 %v763_v29  ;;  %785 = vmatpush3.bf16.msra.mxu1 %v784_v62  ;;  %vm458_vm4 = vcmask 1043459   ;;  %vm460_vm5 = vcmask 1044484   ;;  %vm462_vm6 = vcmask 1045509   ;;  %vm464_vm7 = vcmask 1046534  }
  0x88   :  { %201 = vperm.xlu1 %821, %v131_v39   ;;  %196 = vperm.xlu0 %820, %v130_v40   ;;  %v364_v39 = vmax.f32 %v340_v31, 1.0  ;;  %v363_v40 = vmax.f32 %v331_v28, 1.0  ;;  %v108_v28 = vld [vmem:[#allocation2 + $0x30] sm:$0xff]  ;;  %vm466_vm8 = vcmask 1047559  }
  0x89   :  { %765 = vmatprep.subr.bf16.mxu0 %v1013_v24  ;;  %786 = vmatprep.subr.bf16.mxu1 %v1013_v24 }
  0x8b   :  { %767 = vmatpush3.bf16.msra.mxu0 %v766_v38  ;;  %788 = vmatpush3.bf16.msra.mxu1 %v787_v0  ;;  %v111_v38 = vld [vmem:[#allocation2 + $0x48] sm:$0xff]  ;;  %v117_v0 = vld [vmem:[#allocation2 + $0x78] sm:$0xff] }
  0x8c   :  { %374 = vperm.xlu1 %821, %v360_v12   ;;  %369 = vperm.xlu0 %820, %v359_v13   ;;  %v105_v13 = vld [vmem:[#allocation2 + $0x18] sm:$0xff] }
  0x8d   :  { %768 = vmatprep.subr.bf16.mxu0 %v1013_v24  ;;  %789 = vmatprep.subr.bf16.mxu1 %v1013_v24 }
  0x8f   :  { %791 = vmatpush3.bf16.msra.mxu1 %v790_v3 }
  0x90   :  { %211 = vperm.xlu1 %821, %v1163_v34   ;;  %206 = vperm.xlu0 %820, %v1165_v35   ;;  %v429_v34 = vld [vmem:[#allocation7 + $0x30] sm:$0xff] }
  0x91   :  { %v769_v35 = vpack.c.bf16 %v430_v43, %v429_v34  ;;  %792 = vmatprep.subr.bf16.mxu1 %v1013_v24  ;;  %v112_v34 = vld [vmem:[#allocation2 + $0x50] sm:$0xff] }
  0x93   :  { %770 = vmatpush3.bf16.msra.mxu0 %v769_v35  ;;  %794 = vmatpush3.bf16.msra.mxu1 %v793_v6 }
  0x94   :  { %384 = vperm.xlu1 %821, %v362_v27   ;;  %379 = vperm.xlu0 %820, %v361_v30   ;;  %v109_v27 = vld [vmem:[#allocation2 + $0x38] sm:$0xff] }
  0x95   :  { %771 = vmatprep.subr.bf16.mxu0 %v1013_v24  ;;  %795 = vmatprep.subr.bf16.mxu1 %v1013_v24 }
  0x97   :  { %773 = vmatpush3.bf16.msra.mxu0 %v772_v48 }
  0x98   :  { %394 = vperm.xlu1 %821, %v364_v39   ;;  %389 = vperm.xlu0 %820, %v363_v40   ;;  %v110_v39 = vld [vmem:[#allocation2 + $0x40] sm:$0xff] }
  0x99   :  { %774 = vmatprep.subr.bf16.mxu0 %v1013_v24 }
  0x9b   :  { %776 = vmatpush3.bf16.msra.mxu0 %v775_v51  ;;  %v115_v51 = vld [vmem:[#allocation2 + $0x68] sm:$0xff] }
  0x9c   :  { %404 = vperm.xlu1 %821, %v366_v44   ;;  %399 = vperm.xlu0 %820, %v365_v45  }
  0x9d   :  { %777 = vmatprep.subr.bf16.mxu0 %v1013_v24 }
  0x9f   :  { %779 = vmatpush3.bf16.msra.mxu0 %v778_v54 }
  0xa0   :  { %780 = vmatprep.subr.bf16.mxu0 %v1013_v24 }
  0xa3   :  { %782 = vmatpush3.bf16.msra.mxu0 %v781_v58 }
  0xef   :  { %v147_v7 = vpop.permute.xlu1 %146  ;;  %v137_v8 = vpop.permute.xlu0 %136 }
  0xf0   :  { %v216_v20 = vmul.f32 %v147_v7, %v104_v16  ;;  %v214_v29 = vmul.f32 %v137_v8, %v102_v19 }
  0xf3   :  { %v152_v9 = vpop.permute.xlu1 %151  ;;  %v142_v10 = vpop.permute.xlu0 %141 }
  0xf4   :  { %v217_v18 = vmul.f32 %v152_v9, %v105_v13  ;;  %v215_v21 = vmul.f32 %v142_v10, %v103_v17 }
  0xf6   :  { %v237_v30 = vadd.f32 %v217_v18, %v216_v20  ;;  %v230_v33 = vadd.f32 %v215_v21, %v214_v29 }
  0xf7   :  { %v162_v11 = vpop.permute.xlu1 %161  ;;  %v157_v12 = vpop.permute.xlu0 %156 }
  0xf8   :  { %v219_v31 = vmul.f32 %v162_v11, %v107_v22  ;;  %v218_v32 = vmul.f32 %v157_v12, %v106_v23  ;;  %v238_v43 = vrot.slane %v237_v30, 4  ;;  %v231_v46 = vrot.slane %v230_v33, 4 }
  0xfa   :  { %v244_v35 = vadd.f32 %v219_v31, %v218_v32  ;;  %v239_v54 = vadd.f32 %v238_v43, %v237_v30  ;;  %v232_v59 = vadd.f32 %v231_v46, %v230_v33 }
  0xfb   :  { %v172_v14 = vpop.permute.xlu1 %171  ;;  %v167_v15 = vpop.permute.xlu0 %166 }
  0xfc   :  { %v221_v36 = vmul.f32 %v172_v14, %v109_v27  ;;  %v220_v37 = vmul.f32 %v167_v15, %v108_v28  ;;  %v245_v55 = vrot.slane %v244_v35, 4  ;;  %v240_v2 = vrot.slane %v239_v54, 2 }
  0xfd   :  { %v233_v6 = vrot.slane %v232_v59, 2 }
  0xfe   :  { %v251_v47 = vadd.f32 %v221_v36, %v220_v37  ;;  %v246_v3 = vadd.f32 %v245_v55, %v244_v35  ;;  %v241_v17 = vadd.f32 %v240_v2, %v239_v54 }
  0xff   :  { %v182_v25 = vpop.permute.xlu1 %181  ;;  %v177_v26 = vpop.permute.xlu0 %176  ;;  %v234_v18 = vadd.f32 %v233_v6, %v232_v59 }
 0x100   :  { %v223_v44 = vmul.f32 %v182_v25, %v111_v38  ;;  %v222_v45 = vmul.f32 %v177_v26, %v110_v39  ;;  %v252_v60 = vrot.slane %v251_v47, 4  ;;  %v247_v13 = vrot.slane %v246_v3, 2 }
 0x101   :  { %v242_v29 = vrot.slane %v241_v17, 1  ;;  %v235_v30 = vrot.slane %v234_v18, 1 }
 0x102   :  { %v258_v56 = vadd.f32 %v223_v44, %v222_v45  ;;  %v253_v7 = vadd.f32 %v252_v60, %v251_v47  ;;  %v248_v25 = vadd.f32 %v247_v13, %v246_v3 }
 0x103   :  { %v192_v40 = vpop.permute.xlu1 %191  ;;  %v187_v41 = vpop.permute.xlu0 %186  ;;  %v236_v43 = vadd.f32 %v235_v30, %v234_v18 }
 0x104   :  { %v225_v48 = vmul.f32 %v192_v40, %v113_v42  ;;  %v224_v49 = vmul.f32 %v187_v41, %v112_v34  ;;  %v259_v4 = vrot.slane %v258_v56, 4  ;;  %v254_v19 = vrot.slane %v253_v7, 2 }
 0x105   :  { %v249_v40 = vrot.slane %v248_v25, 1  ;;  %v243_v34 = vadd.f32 %v242_v29, %v241_v17  ;;  %v550_v17 = vld [vmem:[#allocation10 + $0x48] sm:$0xff]  ;;  %v653_v29 = vld [vmem:[#allocation8] ss:$0 sm:$0xff] }
 0x106   :  { %v265_v61 = vadd.f32 %v225_v48, %v224_v49  ;;  %v260_v14 = vadd.f32 %v259_v4, %v258_v56  ;;  %v255_v31 = vadd.f32 %v254_v19, %v253_v7  ;;  %v551_v19 = vld [vmem:[#allocation10 + $0x50] sm:$0xff] }
 0x107   :  { %v202_v50 = vpop.permute.xlu1 %201  ;;  %v197_v52 = vpop.permute.xlu0 %196 }
 0x108   :  { %v227_v57 = vmul.f32 %v202_v50, %v115_v51  ;;  %v226_v58 = vmul.f32 %v197_v52, %v114_v53  ;;  %v266_v8 = vrot.slane %v265_v61, 4  ;;  %v261_v26 = vrot.slane %v260_v14, 2 }
 0x109   :  { %v256_v35 = vrot.slane %v255_v31, 1  ;;  %v250_v51 = vadd.f32 %v249_v40, %v248_v25 }
 0x10a   :  { %v272_v5 = vadd.f32 %v227_v57, %v226_v58  ;;  %v267_v20 = vadd.f32 %v266_v8, %v265_v61  ;;  %v262_v41 = vadd.f32 %v261_v26, %v260_v14  ;;  %v555_v26 = vld [vmem:[#allocation10 + $0x70] sm:$0xff] }
 0x10b   :  { %v375_v62 = vpop.permute.xlu1 %374  ;;  %v370_v63 = vpop.permute.xlu0 %369  ;;  %v257_v55 = vadd.f32 %v256_v35, %v255_v31 }
 0x10c   :  { %822 = vrcp.f32 %v375_v62  ;;  %v273_v15 = vrot.slane %v272_v5, 4  ;;  %v268_v32 = vrot.slane %v267_v20, 2  ;;  %v263_v52 = vrot.slane %v262_v41, 1 }
 0x10d   :  { %824 = vrcp.f32 %v370_v63 }
 0x10e   :  { %v274_v27 = vadd.f32 %v273_v15, %v272_v5  ;;  %v269_v44 = vadd.f32 %v268_v32, %v267_v20  ;;  %v264_v62 = vadd.f32 %v263_v52, %v262_v41  ;;  %v552_v20 = vld [vmem:[#allocation10 + $0x58] sm:$0xff] }
 0x10f   :  { %v212_v9 = vpop.permute.xlu1 %211  ;;  %v207_v10 = vpop.permute.xlu0 %206 }
 0x110   :  { %v229_v11 = vmul.f32 %v212_v9, %v117_v0  ;;  %v228_v12 = vmul.f32 %v207_v10, %v116_v1  ;;  %v275_v42 = vrot.slane %v274_v27, 2  ;;  %v270_v56 = vrot.slane %v269_v44, 1 }
 0x112   :  { %v279_v16 = vadd.f32 %v229_v11, %v228_v12  ;;  %v276_v53 = vadd.f32 %v275_v42, %v274_v27  ;;  %v271_v2 = vadd.f32 %v270_v56, %v269_v44  ;;  %v556_v27 = vld [vmem:[#allocation10 + $0x78] sm:$0xff] }
 0x113   :  { %v385_v21 = vpop.permute.xlu1 %384  ;;  %v380_v22 = vpop.permute.xlu0 %379 }
 0x114   :  { %v280_v23 = vrot.slane %v279_v16, 4  ;;  %826 = vrcp.f32 %v385_v21  ;;  %v277_v63 = vrot.slane %v276_v53, 1  ;;  %v799_v21 = vpack.c.bf16 %v552_v20, %v551_v19 }
 0x115   :  { %828 = vrcp.f32 %v380_v22  ;;  %v553_v22 = vld [vmem:[#allocation10 + $0x60] sm:$0xff] }
 0x116   :  { %v281_v28 = vadd.f32 %v280_v23, %v279_v16  ;;  %v823_v37 = vpop.eup %822  ;;  %v278_v8 = vadd.f32 %v277_v63, %v276_v53  ;;  %v549_v16 = vld [vmem:[#allocation10 + $0x40] sm:$0xff]  ;;  %v554_v23 = vld [vmem:[#allocation10 + $0x68] sm:$0xff] }
 0x117   :  { %v395_v33 = vpop.permute.xlu1 %394  ;;  %v390_v36 = vpop.permute.xlu0 %389  ;;  %v410_v47 = vmul.f32 %v823_v37, %v243_v34  ;;  %v796_v18 = vpack.c.bf16 %v550_v17, %v549_v16  ;;  %v802_v25 = vpack.c.bf16 %v554_v23, %v553_v22  ;;  %v654_v37 = vld [vmem:[#allocation11] ss:$0 sm:$0xff] }
 0x118   :  { %830 = vrcp.f32 %v395_v33  ;;  %v282_v38 = vrot.slane %v281_v28, 2  ;;  %v825_v39 = vpop.eup %824 }
 0x119   :  { %832 = vrcp.f32 %v390_v36  ;;  %v408_v48 = vmul.f32 %v825_v39, %v236_v43  ;;  %797 = vmatpush3.bf16.msra.mxu1 %v796_v18 }
 0x11a   :  { %v283_v49 = vadd.f32 %v282_v38, %v281_v28  ;;  %798 = vmatprep.subr.bf16.mxu1 %v1013_v24  ;;  %v805_v28 = vpack.c.bf16 %v556_v27, %v555_v26 }
 0x11b   :  { %v405_v45 = vpop.permute.xlu1 %404  ;;  %v400_v46 = vpop.permute.xlu0 %399  ;;  %v455_v60 = vsel %vm454_vm2, %v410_v47, %v408_v48 }
 0x11c   :  { %834 = vrcp.f32 %v405_v45  ;;  %v284_v58 = vrot.slane %v283_v49, 1 }
 0x11d   :  { %836 = vrcp.f32 %v400_v46  ;;  %800 = vmatpush3.bf16.msra.mxu1 %v799_v21 }
 0x11e   :  { %v827_v50 = vpop.eup %826  ;;  %v285_v4 = vadd.f32 %v284_v58, %v283_v49  ;;  %801 = vmatprep.subr.bf16.mxu1 %v1013_v24 }
 0x11f   :  { %v829_v54 = vpop.eup %828  ;;  %v414_v59 = vmul.f32 %v827_v50, %v257_v55 }
 0x120   :  { %v412_v57 = vmul.f32 %v829_v54, %v250_v51 }
 0x121   :  { %803 = vmatpush3.bf16.msra.mxu1 %v802_v25 }
 0x122   :  { %v831_v61 = vpop.eup %830  ;;  %v457_v0 = vsel %vm456_vm3, %v412_v57, %v455_v60  ;;  %804 = vmatprep.subr.bf16.mxu1 %v1013_v24 }
 0x123   :  { %v833_v1 = vpop.eup %832  ;;  %v418_v5 = vmul.f32 %v831_v61, %v271_v2  ;;  %v459_v6 = vsel %vm458_vm4, %v414_v59, %v457_v0 }
 0x124   :  { %v416_v3 = vmul.f32 %v833_v1, %v264_v62 }
 0x125   :  { %806 = vmatpush3.bf16.msra.mxu1 %v805_v28 }
 0x126   :  { %v835_v7 = vpop.eup %834  ;;  %v461_v9 = vsel %vm460_vm5, %v416_v3, %v459_v6 }
 0x127   :  { %v837_v10 = vpop.eup %836  ;;  %v422_v11 = vmul.f32 %v835_v7, %v285_v4  ;;  %v463_v13 = vsel %vm462_vm6, %v418_v5, %v461_v9 }
 0x128   :  { %v420_v12 = vmul.f32 %v837_v10, %v278_v8 }
 0x12a   :  { %v465_v14 = vsel %vm464_vm7, %v420_v12, %v463_v13 }
 0x12b   :  { %v467_v15 = vsel %vm466_vm8, %v422_v11, %v465_v14 }
 0x12c   :  { %722 = vmatmul.mubr.f32.vlgmr.msra.gmra.mrb[0].mxu0 %v467_v15 }
 0x1ff   :  { %v535_v30 = vpop.f32.mrb[0].mxu0 }
 0x200   :  { %v536_v31 = vadd.f32 %v653_v29, %v535_v30  ;;  %v723_v32 = vpop.f32.mrb[1].mxu0 }
 0x202   :  { %838 = vtanh.f32 %v536_v31 }
 0x20c   :  { %v839_v33 = vpop.eup %838 }
 0x20d   :  { %v540_v36 = vmax.f32 %v839_v33, 0.0 }
 0x20f   :  { %757 = vmatmul.mubr.f32.vlgmr.msra.gmra.mrb[0].mxu1 %v540_v36 }
 0x2e2   :  { %v630_v38 = vpop.f32.mrb[0].mxu1 }
 0x2e3   :  { %v631_v39 = vadd.f32 %v654_v37, %v630_v38  ;;  %v758_v40 = vpop.f32.mrb[1].mxu1 }
 0x2e5   :  { %634 = vst [vmem:[#allocation13] sm:$0xff] %v631_v39 }
 0x2e6   :  { %983 = shalt.err (!%p980_p10)
}
 0x2e7   :  { %s984_s22 = scalar_lea.hbm %s1209_s6, 128 }
 0x2e8   :  { %p985_p11 = scmp.ne.s32.totalorder %s1209_s6, %s984_s22  ;;  %p988_p12 = scmp.lt.u32.totalorder %s984_s22, %s1209_s6 }
 0x2ea   :  { %p990_p13 = pnand %p988_p12, %p985_p11 }
 0x2ec   :  { %993 = shalt.err (!%p990_p13)
}
 0x2ed   :  { %644 = dma.vmem_to_hbm [thread:$0]  %s642_s10, 128, %s1209_s6, [#allocation4]  }
 0x2ee   :  { %1002 = dma.done.wait [#allocation4], 128  }
 0x2ef   :  { %1003 = vsyncadd [#allocation4], 4294967168 }
 0x2f0   :  { %648 = vsyncpa [#allocation3], 1 }
 0x2f1   :  { %649 = vsyncpa [#allocation6], 1 }
 0x2f2   :  { %650 = vsyncpa [#allocation9], 1 }
 0x2f3   :  { %651 = vsyncpa [#allocation12], 1 }
 0x2f4   :  { %652 = vsyncpa [#allocation4], 1 }

</bundles_post_ra>
